<compile_context>
chip_gen: v7x
topology: tpu7x:2x2x1
jax: 0.10.0
libtpu: 0.0.40
codegen_flags: <defaults>
</compile_context>

<pallas_src>
import functools

import jax
import jax.numpy as jnp
from jax import lax
from jax.experimental import pallas as pl
from jax.experimental.pallas import tpu as pltpu


def _round_up(x, m):
    return (x + m - 1) // m * m


def _instance_loss_kernel(z_ref, loss_ref, acc_ref, *, batch_size, n_valid,
                          tile_m, inv_temperature):
    step = pl.program_id(0)
    n_pad = z_ref.shape[0]

    # ---- step 0: acc <- -(sum of positive logits) -------------------------
    # sum_i sim[i, (i+B)%N] == 2/T * sum_k <z[k], z[B+k]>  -> O(N*D), no masks.
    @pl.when(step == 0)
    def _():
        zi = z_ref[pl.ds(0, batch_size), :].astype(jnp.float32)
        zj = z_ref[pl.ds(batch_size, batch_size), :].astype(jnp.float32)
        acc_ref[0, 0] = -(2.0 * inv_temperature) * jnp.sum(zi * zj)

    # ---- (TM, N_pad) similarity tile --------------------------------------
    # Temperature is folded into the small lhs row tile; dot_general contracts
    # both operands' last (lane) dim so z.T is never materialized.
    r0 = pl.multiple_of(step * tile_m, tile_m)
    lhs = z_ref[pl.ds(r0, tile_m), :] * inv_temperature       # native dtype
    sim = lax.dot_general(
        lhs, z_ref[...],
        dimension_numbers=(((1,), (1,)), ((), ())),
        preferred_element_type=jnp.float32)                    # (TM, N_pad) f32

    # Mask the diagonal (self-similarity) and padded columns out of the
    # logsumexp using only tile-local iotas.
    col = lax.broadcasted_iota(jnp.int32, (tile_m, n_pad), 1)
    row = step * tile_m + lax.broadcasted_iota(jnp.int32, (tile_m, 1), 0)
    mask = col == row
    if n_pad != n_valid:
        mask = mask | (col >= n_valid)
    sim = jnp.where(mask, -jnp.inf, sim)

    # Numerically stable per-row logsumexp, f32 throughout.
    row_max = jnp.max(sim, axis=1, keepdims=True)
    lse = row_max + jnp.log(
        jnp.sum(jnp.exp(sim - row_max), axis=1, keepdims=True))
    if n_pad != n_valid:
        lse = jnp.where(row < n_valid, lse, 0.0)                # drop padded rows

    acc_ref[0, 0] += jnp.sum(lse)

    # ---- last step: loss = (sum_i lse_i - sum_i pos_i) / N -----------------
    @pl.when(step == pl.num_programs(0) - 1)
    def _():
        loss_ref[0, 0] = acc_ref[0, 0] / jnp.float32(n_valid)


def instance_loss(z_i, z_j, *, temperature, tile_m=None):
    """Pallas equivalent of InstanceLoss(batch_size, temperature)(z_i, z_j)."""
    assert z_i.shape == z_j.shape and z_i.ndim == 2
    b, d = z_i.shape
    n = 2 * b
    z = jnp.concatenate([z_i, z_j], axis=0)                    # (N, D), native dtype

    # Lane-align features (zero columns do not change dot products) and pick a
    # row tile: 128 rows per step once N is large enough, else one padded tile.
    d_pad = _round_up(d, 128)
    if tile_m is None:
        tile_m = 128 if n >= 128 else _round_up(n, 8)
    n_pad = _round_up(n, tile_m)
    if d_pad != d or n_pad != n:
        z = jnp.pad(z, ((0, n_pad - n), (0, d_pad - d)))

    kernel = functools.partial(
        _instance_loss_kernel,
        batch_size=b,
        n_valid=n,
        tile_m=tile_m,
        inv_temperature=float(1.0 / temperature),
    )

    itemsize = jnp.dtype(z.dtype).itemsize
    vmem_est = (2 * n_pad * d_pad * itemsize          # resident z (+ headroom)
                + 8 * tile_m * n_pad * 4              # sim tile + f32 temporaries
                + (2 << 20))
    vmem_limit = int(min(64 * 1024 * 1024, max(vmem_est, 32 * 1024 * 1024)))

    out = pl.pallas_call(
        kernel,
        out_shape=jax.ShapeDtypeStruct((1, 1), jnp.float32),
        grid_spec=pltpu.PrefetchScalarGridSpec(
            num_scalar_prefetch=0,
            grid=(n_pad // tile_m,),
            in_specs=[
                # Full z stays resident in VMEM (constant index map); row tiles
                # are sliced from it in-kernel, so HBM traffic is 1x z bytes.
                pl.BlockSpec((n_pad, d_pad), lambda i: (0, 0)),
            ],
            out_specs=pl.BlockSpec(memory_space=pltpu.MemorySpace.SMEM),
            scratch_shapes=[pltpu.SMEM((1, 1), jnp.float32)],
        ),
        compiler_params=pltpu.CompilerParams(
            # The row axis carries the SMEM accumulator -> must be "arbitrary".
            dimension_semantics=("arbitrary",),
            vmem_limit_bytes=vmem_limit,
        ),
    )(z)
    return out[0, 0]


def _instance_loss_ref(z_i, z_j, *, temperature):
    """Pure-JAX reference mirroring the PyTorch forward exactly."""
    b = z_i.shape[0]
    n = 2 * b
    z = jnp.concatenate([z_i, z_j], axis=0).astype(jnp.float32)
    sim = (z @ z.T) / temperature
    sim_i_j = jnp.diagonal(sim, offset=b)
    sim_j_i = jnp.diagonal(sim, offset=-b)
    positive = jnp.concatenate([sim_i_j, sim_j_i], axis=0).reshape(n, 1)

    mask = jnp.ones((n, n), dtype=bool)
    mask = mask.at[jnp.arange(n), jnp.arange(n)].set(False)
    idx = jnp.arange(b)
    mask = mask.at[idx, b + idx].set(False)
    mask = mask.at[b + idx, idx].set(False)
    negative = sim[mask].reshape(n, n - 2)

    logits = jnp.concatenate([positive, negative], axis=1)
    lse = jax.scipy.special.logsumexp(logits, axis=1)
    return jnp.sum(lse - logits[:, 0]) / n


if __name__ == "__main__":
    temperature = 0.5
    key = jax.random.PRNGKey(0)

    # Small case: batch=4, feat=32 (D padded 32 -> 128, single row tile).
    k1, k2, k3, k4 = jax.random.split(key, 4)
    z_i = jax.random.normal(k1, (4, 32), dtype=jnp.float32)
    z_j = jax.random.normal(k2, (4, 32), dtype=jnp.float32)
    loss = instance_loss(z_i, z_j, temperature=temperature)
    jax.block_until_ready(loss)
    ref = _instance_loss_ref(z_i, z_j, temperature=temperature)
    assert jnp.allclose(loss, ref, rtol=1e-4, atol=1e-4), (loss, ref)

    # Larger case exercising the multi-tile grid + N/D padding masks
    # (N = 192 rows -> tiles of 128, padded to 256 rows).
    z_i2 = jax.random.normal(k3, (96, 32), dtype=jnp.float32)
    z_j2 = jax.random.normal(k4, (96, 32), dtype=jnp.float32)
    loss2 = instance_loss(z_i2, z_j2, temperature=temperature)
    jax.block_until_ready(loss2)
    ref2 = _instance_loss_ref(z_i2, z_j2, temperature=temperature)
    assert jnp.allclose(loss2, ref2, rtol=1e-4, atol=1e-4), (loss2, ref2)

    print("KERNEL_OK")
</pallas_src>

<mosaic_0001>
module attributes {stable_mosaic.version = 11 : i64} {
  func.func @_instance_loss_kernel(%arg0: i32, %arg1: memref<8x128xf32, #tpu.memory_space<vmem>>, %arg2: memref<1x1xf32, #tpu.memory_space<smem>>, %arg3: memref<1x1xf32, #tpu.memory_space<smem>>) attributes {dimension_semantics = [#tpu.dimension_semantics<arbitrary>], iteration_bounds = array<i64: 1>, scalar_prefetch = 0 : i64, scratch_operands = 1 : i64, tpu.core_type = #tpu.core_type<tc>, window_params = [{pipeline_mode = #tpu.pipeline_mode<synchronous>, transform_indices = @transform_0, window_bounds = array<i64: 8, 128>}, {transform_indices = @transform_1, window_bounds = array<i64: 1, 1>}]} {
    %c0_i32 = arith.constant 0 : i32
    %0 = arith.cmpi eq, %arg0, %c0_i32 : i32
    %1 = arith.extui %0 : i1 to i32
    %c0_i32_0 = arith.constant 0 : i32
    %2 = arith.cmpi ne, %1, %c0_i32_0 : i32
    scf.if %2 {
      %c0_15 = arith.constant 0 : index
      %c0_16 = arith.constant 0 : index
      %39 = vector.load %arg1[%c0_15, %c0_16] : memref<8x128xf32, #tpu.memory_space<vmem>>, vector<4x128xf32>
      %c4 = arith.constant 4 : index
      %c0_17 = arith.constant 0 : index
      %40 = vector.load %arg1[%c4, %c0_17] : memref<8x128xf32, #tpu.memory_space<vmem>>, vector<4x128xf32>
      %41 = arith.mulf %39, %40 : vector<4x128xf32>
      %42 = vector.shape_cast %41 : vector<4x128xf32> to vector<1x4x128xf32>
      %cst_18 = arith.constant dense<0.000000e+00> : vector<1xf32>
      %43 = vector.multi_reduction <add>, %42, %cst_18 [1, 2] : vector<1x4x128xf32> to vector<1xf32>
      %44 = vector.shape_cast %43 : vector<1xf32> to vector<1x1x1xf32>
      %45 = vector.extract %44[0, 0, 0] : f32 from vector<1x1x1xf32>
      %cst_19 = arith.constant -4.000000e+00 : f32
      %46 = arith.mulf %cst_19, %45 : f32
      %c0_20 = arith.constant 0 : index
      %c0_21 = arith.constant 0 : index
      %47 = memref.load %arg3[%c0_20, %c0_21] : memref<1x1xf32, #tpu.memory_space<smem>>
      memref.store %46, %arg3[%c0_20, %c0_21] : memref<1x1xf32, #tpu.memory_space<smem>>
    } else {
    }
    %c8_i32 = arith.constant 8 : i32
    %3 = arith.muli %arg0, %c8_i32 : i32
    %4 = tpu.assume_multiple %3, 8 : i32
    %5 = arith.index_cast %4 : i32 to index
    %c0 = arith.constant 0 : index
    %6 = vector.load %arg1[%5, %c0] : memref<8x128xf32, #tpu.memory_space<vmem>>, vector<8x128xf32>
    %cst = arith.constant 2.000000e+00 : f32
    %7 = vector.broadcast %cst : f32 to vector<8x128xf32>
    %8 = arith.mulf %6, %7 : vector<8x128xf32>
    %c0_1 = arith.constant 0 : index
    %c0_2 = arith.constant 0 : index
    %9 = vector.load %arg1[%c0_1, %c0_2] : memref<8x128xf32, #tpu.memory_space<vmem>>, vector<8x128xf32>
    %cst_3 = arith.constant dense<0.000000e+00> : vector<8x8xf32>
    %10 = tpu.matmul %8, %9, %cst_3 {dimension_numbers = #tpu.dot_dimension_numbers<[1], [1], [0], [0], [0, 0, 1, 0], [], []>} : vector<8x128xf32>, vector<8x128xf32>, vector<8x8xf32> -> vector<8x8xf32>
    %11 = tpu.iota {dimensions = array<i32: 1>} : vector<8x8xi32>
    %c8_i32_4 = arith.constant 8 : i32
    %12 = arith.muli %arg0, %c8_i32_4 : i32
    %13 = tpu.iota {dimensions = array<i32: 0>} : vector<8x1xi32>
    %14 = vector.broadcast %12 : i32 to vector<8x1xi32>
    %15 = arith.addi %14, %13 : vector<8x1xi32>
    %16 = vector.broadcast %15 : vector<8x1xi32> to vector<8x8xi32>
    %17 = arith.cmpi eq, %11, %16 : vector<8x8xi32>
    %cst_5 = arith.constant 0xFF800000 : f32
    %18 = vector.broadcast %cst_5 : f32 to vector<8x8xf32>
    %19 = arith.select %17, %18, %10 : vector<8x8xi1>, vector<8x8xf32>
    %cst_6 = arith.constant dense<0xFF800000> : vector<8xf32>
    %20 = vector.multi_reduction <maximumf>, %19, %cst_6 [1] : vector<8x8xf32> to vector<8xf32>
    %21 = vector.shape_cast %20 : vector<8xf32> to vector<8x1xf32>
    %22 = vector.broadcast %21 : vector<8x1xf32> to vector<8x8xf32>
    %23 = arith.subf %19, %22 : vector<8x8xf32>
    %24 = math.exp %23 : vector<8x8xf32>
    %cst_7 = arith.constant dense<0.000000e+00> : vector<8xf32>
    %25 = vector.multi_reduction <add>, %24, %cst_7 [1] : vector<8x8xf32> to vector<8xf32>
    %26 = vector.shape_cast %25 : vector<8xf32> to vector<8x1xf32>
    %27 = math.log %26 : vector<8x1xf32>
    %28 = arith.addf %21, %27 : vector<8x1xf32>
    %c0_8 = arith.constant 0 : index
    %c0_9 = arith.constant 0 : index
    %29 = memref.load %arg3[%c0_8, %c0_9] : memref<1x1xf32, #tpu.memory_space<smem>>
    %30 = vector.shape_cast %28 : vector<8x1xf32> to vector<1x8x1xf32>
    %cst_10 = arith.constant dense<0.000000e+00> : vector<1xf32>
    %31 = vector.multi_reduction <add>, %30, %cst_10 [1, 2] : vector<1x8x1xf32> to vector<1xf32>
    %32 = vector.shape_cast %31 : vector<1xf32> to vector<1x1x1xf32>
    %33 = vector.extract %32[0, 0, 0] : f32 from vector<1x1x1xf32>
    %34 = arith.addf %29, %33 : f32
    %c0_11 = arith.constant 0 : index
    %c0_12 = arith.constant 0 : index
    %35 = memref.load %arg3[%c0_11, %c0_12] : memref<1x1xf32, #tpu.memory_space<smem>>
    memref.store %34, %arg3[%c0_11, %c0_12] : memref<1x1xf32, #tpu.memory_space<smem>>
    %c0_i32_13 = arith.constant 0 : i32
    %36 = arith.cmpi eq, %arg0, %c0_i32_13 : i32
    %37 = arith.extui %36 : i1 to i32
    %c0_i32_14 = arith.constant 0 : i32
    %38 = arith.cmpi ne, %37, %c0_i32_14 : i32
    scf.if %38 {
      %c0_15 = arith.constant 0 : index
      %c0_16 = arith.constant 0 : index
      %39 = memref.load %arg3[%c0_15, %c0_16] : memref<1x1xf32, #tpu.memory_space<smem>>
      %cst_17 = arith.constant 8.000000e+00 : f32
      %40 = arith.divf %39, %cst_17 : f32
      %c0_18 = arith.constant 0 : index
      %c0_19 = arith.constant 0 : index
      %41 = memref.load %arg2[%c0_18, %c0_19] : memref<1x1xf32, #tpu.memory_space<smem>>
      memref.store %40, %arg2[%c0_18, %c0_19] : memref<1x1xf32, #tpu.memory_space<smem>>
    } else {
    }
    return
  }
  func.func @transform_0(%arg0: i32) -> (i32, i32) {
    %c0_i32 = arith.constant 0 : i32
    %c0_i32_0 = arith.constant 0 : i32
    %c0_i32_1 = arith.constant 0 : i32
    return %c0_i32, %c0_i32_0 : i32, i32
  }
  func.func @transform_1(%arg0: i32) -> (i32, i32) {
    %c0_i32 = arith.constant 0 : i32
    %c0_i32_0 = arith.constant 0 : i32
    %c0_i32_1 = arith.constant 0 : i32
    return %c0_i32, %c0_i32_0 : i32, i32
  }
}

</mosaic_0001>

<bundles_post_ra>
// kernel: tpu_custom_call.1
= control target key start
LH: loop header
LB: loop body
LE: loop exit
PB: predicated region body
PF: predicated region fallthrough
CT: control target
= control target key end

     0   :  { %6 = vsyncpa [#allocation4], 0  ;;  %s269_s0 = inlined_call_operand.hbm [shape: f32[8,128], index: 0, kind: input, shape index: {}]   ;;  %s270_s1 = inlined_call_operand.hbm [shape: f32[1,1], index: 1, kind: output, shape index: {}]  }
   0x1   :  { %7 = vsyncpa [#allocation5], 0  ;;  %s231_s6 = smov [#allocation3]   ;;  %s195_s10 = scalar_lea.hbm %s269_s0, 128 }
   0x2   :  { %s14_s7 = sshll.u32 %s231_s6, 4  ;;  %p196_p0 = scmp.ne.s32.totalorder %s269_s0, %s195_s10  ;;  %s15_s7 = int_to_ptr.vmem [resolvable:$true] %s14_s7 }
   0x3   :  { %p199_p1 = scmp.lt.u32.totalorder %s195_s10, %s269_s0 }
   0x5   :  { %p201_p2 = pnand %p199_p1, %p196_p0 }
   0x7   :  { %204 = shalt.err (!%p201_p2)
}
   0x8   :  { %s205_s15 = scalar_lea.vmem %s15_s7, 128  ;;  %p210_p4 = scmp.lt.s32.totalorder %s15_s7, %s15_s7 }
   0x9   :  { %p206_p3 = scmp.ne.s32.totalorder %s15_s7, %s205_s15  ;;  %p211_p5 = scmp.lt.s32.totalorder %s205_s15, %s205_s15 }
   0xb   :  { %p212_p6 = por %p211_p5, %p210_p4 }
   0xd   :  { %p213_p7 = pnand %p212_p6, %p206_p3 }
   0xf   :  { %216 = shalt.err (!%p213_p7)
}
  0x10   :  { %17 = dma.hbm_to_vmem [thread:$0]  %s269_s0, 128, %s15_s7, [#allocation4]  }
  0x11   :  { %227 = dma.done.wait [#allocation4], 128  }
  0x12   :  { %228 = vsyncadd [#allocation4], 4294967168  ;;  %v232_v0 = vmov 0.0   ;;  %vm233_vm0 = vmmov 0   ;;  %v46_v1 = vld [vmem:[#allocation3] sm:$0xff]  ;;  %v117_v3 = vlaneseq  ;;  %vm125_vm2 = vcmask 64512  }
  0x13   :  { %178 = vmatprep.subr.mxu0 %v232_v0  ;;  %180 = vmatprep.mubr.msk.f32.mxu0 %vm233_vm0, %v232_v0  ;;  %v45_v2 = vmul.f32 2.0, %v46_v1  ;;  %v25_v15 = vld [vmem:[#allocation3] sm:$0xf]  ;;  %v26_v16 = vld [vmem:[#allocation3 + $0x4] sm:$0xf]  ;;  %vm28_vm3 = vcmask 1043456  }
  0x14   :  { %179 = vmatpush3.xpose.msra.mxu0 %v46_v1  ;;  %v118_v4 = vand.u32 127, %v117_v3  ;;  %v120_v5 = vshrl.u32 %v117_v3, 7  ;;  %v27_v17 = vmul.f32 %v26_v16, %v25_v15  ;;  %vm139_vm4 = vcmask 7168   ;;  %s217_s24 = scalar_lea.hbm %s270_s1, 16 }
  0x15   :  { %p218_p8 = scmp.ne.s32.totalorder %s270_s1, %s217_s24  ;;  %p221_p9 = scmp.lt.u32.totalorder %s217_s24, %s270_s1 }
  0x16   :  { %vm123_vm1 = vcmp.eq.s32.totalorder %v118_v4, %v120_v5  ;;  %v29_v18 = vsel %vm28_vm3, %v27_v17, 0.0 }
  0x17   :  { %181 = vmatmul.mubr.f32.vlgmr.msra.gmra.mrb[0].mxu0 %v45_v2  ;;  %30 = vadd.xlane.f32.xlu1 %v29_v18  ;;  %p223_p10 = pnand %p221_p9, %p218_p8 }
  0xa4   :  { %v31_v24 = vpop.xlane.xlu1 %30 }
  0xa5   :  { %v32_v25 = vrot.slane %v31_v24, 4 }
  0xa7   :  { %v33_v26 = vadd.f32 %v32_v25, %v31_v24 }
  0xa9   :  { %v34_v27 = vrot.slane %v33_v26, 2 }
  0xab   :  { %v35_v28 = vadd.f32 %v34_v27, %v33_v26 }
  0xad   :  { %v36_v29 = vrot.slane %v35_v28, 1 }
  0xaf   :  { %v37_v30 = vadd.f32 %v36_v29, %v35_v28 }
  0xb1   :  { %183 = vpush %v37_v30 }
  0xe2   :  { %s184_s0 = spop %183 }
  0xe3   :  { %s39_s18 = smul.f32 -4.0, %s184_s0 }
  0xea   :  { %v113_v6 = vpop.f32.mrb[0].mxu0 }
  0xeb   :  { %v124_v7 = vsel %vm123_vm1, -inf, %v113_v6  ;;  %v182_v8 = vpop.f32.mrb[1].mxu0 }
  0xec   :  { %v126_v9 = vsel %vm125_vm2, %v124_v7, -inf }
  0xed   :  { %127 = vmax.xlane.f32.xlu0 %v126_v9 }
 0x17a   :  { %v128_v10 = vpop.xlane.xlu0 %127 }
 0x17b   :  { %v129_v11 = vsub.f32 %v124_v7, %v128_v10 }
 0x17d   :  { %v130_v12 = vmul.f32 1.442695, %v129_v11 }
 0x17f   :  { %191 = vpow2.f32 %v130_v12 }
 0x189   :  { %v192_v13 = vpop.eup %191 }
 0x18a   :  { %v132_v14 = vsel %vm125_vm2, %v192_v13, 0.0 }
 0x18b   :  { %133 = vadd.xlane.f32.xlu0 %v132_v14 }
 0x218   :  { %v134_v19 = vpop.xlane.xlu0 %133 }
 0x219   :  { %193 = vlog2.f32 %v134_v19 }
 0x223   :  { %v194_v20 = vpop.eup %193 }
 0x224   :  { %v136_v21 = vmul.f32 0.6931472, %v194_v20 }
 0x226   :  { %v137_v22 = vadd.f32 %v136_v21, %v128_v10 }
 0x228   :  { %v140_v23 = vsel %vm139_vm4, %v137_v22, 0.0 }
 0x229   :  { %141 = vadd.xlane.f32.xlu1 %v140_v23 }
 0x2b6   :  { %v142_v31 = vpop.xlane.xlu1 %141 }
 0x2b7   :  { %v143_v32 = vrot.slane %v142_v31, 4 }
 0x2b9   :  { %v144_v33 = vadd.f32 %v143_v32, %v142_v31 }
 0x2bb   :  { %v145_v34 = vrot.slane %v144_v33, 2 }
 0x2bd   :  { %v146_v35 = vadd.f32 %v145_v34, %v144_v33 }
 0x2bf   :  { %v147_v36 = vrot.slane %v146_v35, 1 }
 0x2c1   :  { %v148_v37 = vadd.f32 %v147_v36, %v146_v35 }
 0x2c3   :  { %185 = vpush %v148_v37 }
 0x2f4   :  { %s186_s19 = spop %185 }
 0x2f5   :  { %s150_s20 = sadd.f32 %s186_s19, %s39_s18 }
 0x2f7   :  { %s159_s21 = smul.f32 0.125, %s150_s20 }
 0x2f9   :  { %161 = sst [smem:[#allocation6]] %s159_s21 }
 0x2fa   :  { %226 = shalt.err (!%p223_p10)
}
 0x2fb   :  { %s234_s29 = smov [#allocation6]  }
 0x2fc   :  { %169 = dma.smem_to_hbm %s234_s29, 16, %s270_s1, [#allocation5]  }
 0x2fd   :  { %229 = dma.done.wait [#allocation5], 16  }
 0x2fe   :  { %230 = vsyncadd [#allocation5], 4294967280 }
 0x2ff   :  { %173 = sfence }
 0x300   :  { %174 = vsyncpa [#allocation4], 1 }
 0x301   :  { %175 = vsyncpa [#allocation5], 1 }

</bundles_post_ra>
